<compile_context>
chip_gen: v7x
topology: tpu7x:2x2x1
jax: 0.10.0
libtpu: 0.0.40
codegen_flags: <defaults>
</compile_context>

<pallas_src>
import jax
import jax.numpy as jnp
from jax import lax
from jax.experimental import pallas as pl
from jax.experimental.pallas import tpu as pltpu


def _round_up(x, m):
    return (x + m - 1) // m * m


# ----------------------------- Pallas kernel --------------------------------
def _dirt_kernel(xt_ref, xa_ref, xb_ref, w1_ref, b1_ref, w2_ref, b2_ref, out_ref):
    def head(n, x):
        # [32, K] (bf16) @ [tile_b, K]^T (bf16) -> [32, tile_b] f32 (batch on lanes)
        acc = lax.dot_general(w1_ref[n], x, (((1,), (1,)), ((), ())),
                              preferred_element_type=jnp.float32)
        h = jnp.maximum(acc + b1_ref[n], 0.0).astype(jnp.bfloat16)   # Dropout = id
        # [1, 32] @ [32, tile_b] -> [1, tile_b] f32
        return lax.dot_general(w2_ref[n], h, (((1,), (0,)), ((), ())),
                               preferred_element_type=jnp.float32)

    s = jnp.concatenate([head(0, xt_ref[...]),       # theta(stu_emb)
                         head(1, xa_ref[...]),       # a(e_difficulty_emb)
                         head(2, xb_ref[...])],      # b(k_difficulty_emb)
                        axis=0) + b2_ref[...]        # [3, tile_b]
    sg = jax.nn.sigmoid(s)                           # one full-tile EUP pass
    stat = 8.0 * (sg[0:1, :] - 0.5)
    e_d = 2.0 * sg[1:2, :]
    k_d = 8.0 * (sg[2:3, :] - 0.5)
    out_ref[...] = jax.nn.sigmoid(jnp.exp(-1.7 * e_d * (stat - k_d)))   # (1, tile_b)


# ----------------------------- Wrapper ---------------------------------------
def _choose_tile_b(b_pad, K, vmem_budget=20 * 1024 * 1024):
    # Resident bytes per batch row: 3 slabs x 2 buffers x K x 2 (bf16 stream)
    # plus ~1 KiB of per-head f32/bf16 intermediates + output double-buffer.
    per_row = 12 * K + 1024
    cap = max(128, (vmem_budget // per_row) // 128 * 128)
    cap = min(cap, 16384)
    # Keep >=2 grid steps where the batch allows it (v7x: 2 TensorCores).
    return int(min(cap, max(128, _round_up(pl.cdiv(b_pad, 2), 128))))


def dirt_forward_pallas(x_t, x_a, x_b, w1, b1, w2, b2, *, valid_b, tile_b=None):
    """x_*: [b_pad, K] bf16 slabs (b_pad a multiple of 128). Returns [valid_b] f32."""
    b_pad, K = x_t.shape
    if tile_b is None:
        tile_b = _choose_tile_b(b_pad, K)
    grid = (pl.cdiv(b_pad, tile_b),)

    x_spec = pl.BlockSpec((tile_b, K), lambda i: (i, 0))      # streamed activations
    out = pl.pallas_call(
        _dirt_kernel,
        out_shape=jax.ShapeDtypeStruct((1, b_pad), jnp.float32),
        grid_spec=pltpu.PrefetchScalarGridSpec(
            num_scalar_prefetch=0,
            grid=grid,
            in_specs=[
                x_spec, x_spec, x_spec,
                pl.BlockSpec((3, 32, K), lambda i: (0, 0, 0)),   # resident W1 stack
                pl.BlockSpec((3, 32, 1), lambda i: (0, 0, 0)),   # resident b1
                pl.BlockSpec((3, 1, 32), lambda i: (0, 0, 0)),   # resident W2 stack
                pl.BlockSpec((3, 1), lambda i: (0, 0)),          # resident b2
            ],
            out_specs=pl.BlockSpec((1, tile_b), lambda i: (0, i)),   # lane-dense
        ),
        compiler_params=pltpu.CompilerParams(
            dimension_semantics=("parallel",),
            vmem_limit_bytes=48 * 1024 * 1024),
    )(x_t, x_a, x_b, w1, b1, w2, b2)
    return out[0, :valid_b]                           # matches output_1.view(-1)


# ----------------------------- Parameter packing -----------------------------
def pack_dirt_params(params):
    """Stack the 3 MLP heads: W1 [3,32,K] bf16, b1 [3,32,1] f32, W2 [3,1,32] bf16,
    b2 [3,1] f32. Head order (theta, a, b) matches the (stu | e | k) inputs."""
    heads = ("theta", "a", "b")
    w1 = jnp.stack([params[f"{n}_w1"].T for n in heads]).astype(jnp.bfloat16)
    b1 = jnp.stack([params[f"{n}_b1"].reshape(32, 1) for n in heads])
    w2 = jnp.stack([params[f"{n}_w2"].reshape(1, 32) for n in heads]).astype(jnp.bfloat16)
    b2 = jnp.stack([params[f"{n}_b2"].reshape(1) for n in heads])
    return w1, b1, w2, b2


# ----------------------------- Parameter init --------------------------------
def _xavier_normal(key, fan_in, fan_out, shape):
    std = (2.0 / (fan_in + fan_out)) ** 0.5
    return std * jax.random.normal(key, shape, dtype=jnp.float32)


def init_params(key, knowledge_n, exer_n, word_n, student_n):
    K = knowledge_n
    ks = jax.random.split(key, 16)
    p = {}
    # embeddings ("weight" params -> xavier_normal, like the PyTorch init loop)
    p["student_emb"] = _xavier_normal(ks[0], student_n, K, (student_n, K))
    p["k_difficulty"] = _xavier_normal(ks[1], word_n, K, (word_n, K))
    p["e_difficulty"] = _xavier_normal(ks[2], word_n, K, (word_n, K))
    p["k_difficulty_i"] = _xavier_normal(ks[3], exer_n, K, (exer_n, K))
    p["e_difficulty_i"] = _xavier_normal(ks[4], exer_n, K, (exer_n, K))
    # MLP heads a, b, theta: Linear(K,32) -> Linear(32,1); weights stored (in,out)
    for i, name in enumerate(("a", "b", "theta")):
        k1, k2, k3, k4 = jax.random.split(ks[5 + i], 4)
        p[f"{name}_w1"] = _xavier_normal(k1, K, 32, (K, 32))
        p[f"{name}_b1"] = jax.random.uniform(
            k2, (1, 32), jnp.float32, -1.0 / K ** 0.5, 1.0 / K ** 0.5)
        p[f"{name}_w2"] = _xavier_normal(k3, 32, 1, (32, 1))
        p[f"{name}_b2"] = jax.random.uniform(
            k4, (1, 1), jnp.float32, -1.0 / 32 ** 0.5, 1.0 / 32 ** 0.5)
    return p


# ----------------------------- Full forward (glue + kernel) ------------------
def net_dirt_forward(params, stu_id, input_exercise, inut_word, inut_format,
                     inut_section, inut_wordlen, inut_cefr, input_knowledge_point):
    # NOTE: the reference forward also builds format/section/cefr one-hots and
    # the exercise-level *_i embeddings but never uses them -> dead code, omitted.
    B = stu_id.shape[0]
    b_pad = _round_up(B, 128)                        # lane alignment only
    pad = (0, b_pad - B)
    stu = jnp.pad(stu_id.astype(jnp.int32), pad)     # pad indices (cheap), not slabs
    wrd = jnp.pad(inut_word.astype(jnp.int32), pad)
    # Gather straight into bf16 so each slab hits HBM once, at half width.
    x_t = params["student_emb"].astype(jnp.bfloat16)[stu]     # theta input
    x_a = params["e_difficulty"].astype(jnp.bfloat16)[wrd]    # a input
    x_b = params["k_difficulty"].astype(jnp.bfloat16)[wrd]    # b input
    w1, b1, w2, b2 = pack_dirt_params(params)
    return dirt_forward_pallas(x_t, x_a, x_b, w1, b1, w2, b2, valid_b=B)


# ----------------------------- Reference (pure JAX, f32, per-head) -----------
def _reference(params, stu_emb, e_emb, k_emb):
    def mlp(x, n):
        h = jnp.maximum(x @ params[f"{n}_w1"] + params[f"{n}_b1"], 0.0)
        return h @ params[f"{n}_w2"] + params[f"{n}_b2"]
    stat = 8.0 * (jax.nn.sigmoid(mlp(stu_emb, "theta")) - 0.5)
    e_d = jax.nn.sigmoid(mlp(e_emb, "a")) * 2.0
    k_d = 8.0 * (jax.nn.sigmoid(mlp(k_emb, "b")) - 0.5)
    return jax.nn.sigmoid(jnp.exp(-1.7 * e_d * (stat - k_d))).reshape(-1)


if __name__ == "__main__":
    knowledge_n, exer_n, word_n, student_n = 32, 10, 12, 6
    B = 8

    key = jax.random.PRNGKey(0)
    kp, k1, k2, k3, k4, k5, k6, k7 = jax.random.split(key, 8)
    params = init_params(kp, knowledge_n, exer_n, word_n, student_n)

    stu_id = jax.random.randint(k1, (B,), 0, student_n)
    input_exercise = jax.random.randint(k2, (B,), 0, exer_n)
    inut_word = jax.random.randint(k3, (B,), 0, word_n)
    inut_format = jax.random.randint(k4, (B,), 0, 5)
    inut_section = jax.random.randint(k5, (B,), 1, 20)
    inut_wordlen = jax.random.randint(k6, (B,), 1, 12)
    inut_cefr = jax.random.randint(k7, (B,), 0, 6)
    input_knowledge_point = jnp.zeros((B, knowledge_n), jnp.float32)

    forward = jax.jit(net_dirt_forward)
    out = forward(params, stu_id, input_exercise, inut_word, inut_format,
                  inut_section, inut_wordlen, inut_cefr, input_knowledge_point)
    out = jax.block_until_ready(out)

    ref = _reference(params,
                     params["student_emb"][stu_id],
                     params["e_difficulty"][inut_word],
                     params["k_difficulty"][inut_word])
    assert out.shape == (B,), out.shape
    # bf16 activation/weight stream -> relaxed tolerance vs the f32 reference.
    assert jnp.allclose(out, ref, atol=2e-2, rtol=2e-2), (out, ref)
    print("KERNEL_OK")
</pallas_src>

<mosaic_0001>
module attributes {stable_mosaic.version = 11 : i64} {
  func.func @_dirt_kernel(%arg0: i32, %arg1: memref<128x32xbf16, #tpu.memory_space<vmem>>, %arg2: memref<128x32xbf16, #tpu.memory_space<vmem>>, %arg3: memref<128x32xbf16, #tpu.memory_space<vmem>>, %arg4: memref<3x32x32xbf16, #tpu.memory_space<vmem>>, %arg5: memref<3x32x1xf32, #tpu.memory_space<vmem>>, %arg6: memref<3x1x32xbf16, #tpu.memory_space<vmem>>, %arg7: memref<3x1xf32, #tpu.memory_space<vmem>>, %arg8: memref<1x128xf32, #tpu.memory_space<vmem>>) attributes {dimension_semantics = [#tpu.dimension_semantics<parallel>], iteration_bounds = array<i64: 1>, scalar_prefetch = 0 : i64, scratch_operands = 0 : i64, tpu.core_type = #tpu.core_type<tc>, window_params = [{transform_indices = @transform_0, window_bounds = array<i64: 128, 32>}, {transform_indices = @transform_1, window_bounds = array<i64: 128, 32>}, {transform_indices = @transform_2, window_bounds = array<i64: 128, 32>}, {pipeline_mode = #tpu.pipeline_mode<synchronous>, transform_indices = @transform_3, window_bounds = array<i64: 3, 32, 32>}, {pipeline_mode = #tpu.pipeline_mode<synchronous>, transform_indices = @transform_4, window_bounds = array<i64: 3, 32, 1>}, {pipeline_mode = #tpu.pipeline_mode<synchronous>, transform_indices = @transform_5, window_bounds = array<i64: 3, 1, 32>}, {pipeline_mode = #tpu.pipeline_mode<synchronous>, transform_indices = @transform_6, window_bounds = array<i64: 3, 1>}, {transform_indices = @transform_7, window_bounds = array<i64: 1, 128>}]} {
    %c0 = arith.constant 0 : index
    %c0_0 = arith.constant 0 : index
    %0 = vector.load %arg1[%c0, %c0_0] : memref<128x32xbf16, #tpu.memory_space<vmem>>, vector<128x32xbf16>
    %c0_1 = arith.constant 0 : index
    %c0_2 = arith.constant 0 : index
    %c0_3 = arith.constant 0 : index
    %1 = vector.load %arg4[%c0_1, %c0_2, %c0_3] : memref<3x32x32xbf16, #tpu.memory_space<vmem>>, vector<1x32x32xbf16>
    %2 = vector.shape_cast %1 : vector<1x32x32xbf16> to vector<32x32xbf16>
    %cst = arith.constant dense<0.000000e+00> : vector<32x128xf32>
    %3 = tpu.matmul %2, %0, %cst {dimension_numbers = #tpu.dot_dimension_numbers<[1], [1], [0], [0], [0, 0, 1, 0], [], []>} : vector<32x32xbf16>, vector<128x32xbf16>, vector<32x128xf32> -> vector<32x128xf32>
    %c0_4 = arith.constant 0 : index
    %c0_5 = arith.constant 0 : index
    %c0_6 = arith.constant 0 : index
    %4 = vector.load %arg5[%c0_4, %c0_5, %c0_6] : memref<3x32x1xf32, #tpu.memory_space<vmem>>, vector<1x32x1xf32>
    %5 = vector.shape_cast %4 : vector<1x32x1xf32> to vector<32x1xf32>
    %6 = vector.broadcast %5 : vector<32x1xf32> to vector<32x128xf32>
    %7 = arith.addf %3, %6 : vector<32x128xf32>
    %cst_7 = arith.constant 0.000000e+00 : f32
    %8 = vector.broadcast %cst_7 : f32 to vector<32x128xf32>
    %9 = arith.maximumf %7, %8 : vector<32x128xf32>
    %10 = arith.truncf %9 : vector<32x128xf32> to vector<32x128xbf16>
    %c0_8 = arith.constant 0 : index
    %c0_9 = arith.constant 0 : index
    %c0_10 = arith.constant 0 : index
    %11 = vector.load %arg6[%c0_8, %c0_9, %c0_10] : memref<3x1x32xbf16, #tpu.memory_space<vmem>>, vector<1x1x32xbf16>
    %12 = vector.shape_cast %11 : vector<1x1x32xbf16> to vector<1x32xbf16>
    %cst_11 = arith.constant dense<0.000000e+00> : vector<1x128xf32>
    %13 = tpu.matmul %12, %10, %cst_11 {dimension_numbers = #tpu.dot_dimension_numbers<[1], [0], [0], [1], [0, 0, 1, 1], [], []>} : vector<1x32xbf16>, vector<32x128xbf16>, vector<1x128xf32> -> vector<1x128xf32>
    %c0_12 = arith.constant 0 : index
    %c0_13 = arith.constant 0 : index
    %14 = vector.load %arg2[%c0_12, %c0_13] : memref<128x32xbf16, #tpu.memory_space<vmem>>, vector<128x32xbf16>
    %c1 = arith.constant 1 : index
    %c0_14 = arith.constant 0 : index
    %c0_15 = arith.constant 0 : index
    %15 = vector.load %arg4[%c1, %c0_14, %c0_15] : memref<3x32x32xbf16, #tpu.memory_space<vmem>>, vector<1x32x32xbf16>
    %16 = vector.shape_cast %15 : vector<1x32x32xbf16> to vector<32x32xbf16>
    %cst_16 = arith.constant dense<0.000000e+00> : vector<32x128xf32>
    %17 = tpu.matmul %16, %14, %cst_16 {dimension_numbers = #tpu.dot_dimension_numbers<[1], [1], [0], [0], [0, 0, 1, 0], [], []>} : vector<32x32xbf16>, vector<128x32xbf16>, vector<32x128xf32> -> vector<32x128xf32>
    %c1_17 = arith.constant 1 : index
    %c0_18 = arith.constant 0 : index
    %c0_19 = arith.constant 0 : index
    %18 = vector.load %arg5[%c1_17, %c0_18, %c0_19] : memref<3x32x1xf32, #tpu.memory_space<vmem>>, vector<1x32x1xf32>
    %19 = vector.shape_cast %18 : vector<1x32x1xf32> to vector<32x1xf32>
    %20 = vector.broadcast %19 : vector<32x1xf32> to vector<32x128xf32>
    %21 = arith.addf %17, %20 : vector<32x128xf32>
    %cst_20 = arith.constant 0.000000e+00 : f32
    %22 = vector.broadcast %cst_20 : f32 to vector<32x128xf32>
    %23 = arith.maximumf %21, %22 : vector<32x128xf32>
    %24 = arith.truncf %23 : vector<32x128xf32> to vector<32x128xbf16>
    %c1_21 = arith.constant 1 : index
    %c0_22 = arith.constant 0 : index
    %c0_23 = arith.constant 0 : index
    %25 = vector.load %arg6[%c1_21, %c0_22, %c0_23] : memref<3x1x32xbf16, #tpu.memory_space<vmem>>, vector<1x1x32xbf16>
    %26 = vector.shape_cast %25 : vector<1x1x32xbf16> to vector<1x32xbf16>
    %cst_24 = arith.constant dense<0.000000e+00> : vector<1x128xf32>
    %27 = tpu.matmul %26, %24, %cst_24 {dimension_numbers = #tpu.dot_dimension_numbers<[1], [0], [0], [1], [0, 0, 1, 1], [], []>} : vector<1x32xbf16>, vector<32x128xbf16>, vector<1x128xf32> -> vector<1x128xf32>
    %c0_25 = arith.constant 0 : index
    %c0_26 = arith.constant 0 : index
    %28 = vector.load %arg3[%c0_25, %c0_26] : memref<128x32xbf16, #tpu.memory_space<vmem>>, vector<128x32xbf16>
    %c2 = arith.constant 2 : index
    %c0_27 = arith.constant 0 : index
    %c0_28 = arith.constant 0 : index
    %29 = vector.load %arg4[%c2, %c0_27, %c0_28] : memref<3x32x32xbf16, #tpu.memory_space<vmem>>, vector<1x32x32xbf16>
    %30 = vector.shape_cast %29 : vector<1x32x32xbf16> to vector<32x32xbf16>
    %cst_29 = arith.constant dense<0.000000e+00> : vector<32x128xf32>
    %31 = tpu.matmul %30, %28, %cst_29 {dimension_numbers = #tpu.dot_dimension_numbers<[1], [1], [0], [0], [0, 0, 1, 0], [], []>} : vector<32x32xbf16>, vector<128x32xbf16>, vector<32x128xf32> -> vector<32x128xf32>
    %c2_30 = arith.constant 2 : index
    %c0_31 = arith.constant 0 : index
    %c0_32 = arith.constant 0 : index
    %32 = vector.load %arg5[%c2_30, %c0_31, %c0_32] : memref<3x32x1xf32, #tpu.memory_space<vmem>>, vector<1x32x1xf32>
    %33 = vector.shape_cast %32 : vector<1x32x1xf32> to vector<32x1xf32>
    %34 = vector.broadcast %33 : vector<32x1xf32> to vector<32x128xf32>
    %35 = arith.addf %31, %34 : vector<32x128xf32>
    %cst_33 = arith.constant 0.000000e+00 : f32
    %36 = vector.broadcast %cst_33 : f32 to vector<32x128xf32>
    %37 = arith.maximumf %35, %36 : vector<32x128xf32>
    %38 = arith.truncf %37 : vector<32x128xf32> to vector<32x128xbf16>
    %c2_34 = arith.constant 2 : index
    %c0_35 = arith.constant 0 : index
    %c0_36 = arith.constant 0 : index
    %39 = vector.load %arg6[%c2_34, %c0_35, %c0_36] : memref<3x1x32xbf16, #tpu.memory_space<vmem>>, vector<1x1x32xbf16>
    %40 = vector.shape_cast %39 : vector<1x1x32xbf16> to vector<1x32xbf16>
    %cst_37 = arith.constant dense<0.000000e+00> : vector<1x128xf32>
    %41 = tpu.matmul %40, %38, %cst_37 {dimension_numbers = #tpu.dot_dimension_numbers<[1], [0], [0], [1], [0, 0, 1, 1], [], []>} : vector<1x32xbf16>, vector<32x128xbf16>, vector<1x128xf32> -> vector<1x128xf32>
    %42 = tpu.concatenate %13, %27, %41 in 0 : vector<1x128xf32>, vector<1x128xf32>, vector<1x128xf32> -> vector<3x128xf32>
    %c0_38 = arith.constant 0 : index
    %c0_39 = arith.constant 0 : index
    %43 = vector.load %arg7[%c0_38, %c0_39] : memref<3x1xf32, #tpu.memory_space<vmem>>, vector<3x1xf32>
    %44 = vector.broadcast %43 : vector<3x1xf32> to vector<3x128xf32>
    %45 = arith.addf %42, %44 : vector<3x128xf32>
    %46 = arith.negf %45 : vector<3x128xf32>
    %47 = math.exp %46 : vector<3x128xf32>
    %cst_40 = arith.constant 1.000000e+00 : f32
    %48 = vector.broadcast %cst_40 : f32 to vector<3x128xf32>
    %49 = arith.addf %48, %47 : vector<3x128xf32>
    %50 = arith.divf %48, %49 : vector<3x128xf32>
    %51 = vector.extract_strided_slice %50 {offsets = [0, 0], sizes = [1, 128], strides = [1, 1]} : vector<3x128xf32> to vector<1x128xf32>
    %cst_41 = arith.constant 5.000000e-01 : f32
    %52 = vector.broadcast %cst_41 : f32 to vector<1x128xf32>
    %53 = arith.subf %51, %52 : vector<1x128xf32>
    %cst_42 = arith.constant 8.000000e+00 : f32
    %54 = vector.broadcast %cst_42 : f32 to vector<1x128xf32>
    %55 = arith.mulf %54, %53 : vector<1x128xf32>
    %56 = vector.extract_strided_slice %50 {offsets = [1, 0], sizes = [1, 128], strides = [1, 1]} : vector<3x128xf32> to vector<1x128xf32>
    %cst_43 = arith.constant 2.000000e+00 : f32
    %57 = vector.broadcast %cst_43 : f32 to vector<1x128xf32>
    %58 = arith.mulf %57, %56 : vector<1x128xf32>
    %59 = vector.extract_strided_slice %50 {offsets = [2, 0], sizes = [1, 128], strides = [1, 1]} : vector<3x128xf32> to vector<1x128xf32>
    %cst_44 = arith.constant 5.000000e-01 : f32
    %60 = vector.broadcast %cst_44 : f32 to vector<1x128xf32>
    %61 = arith.subf %59, %60 : vector<1x128xf32>
    %cst_45 = arith.constant 8.000000e+00 : f32
    %62 = vector.broadcast %cst_45 : f32 to vector<1x128xf32>
    %63 = arith.mulf %62, %61 : vector<1x128xf32>
    %cst_46 = arith.constant -1.700000e+00 : f32
    %64 = vector.broadcast %cst_46 : f32 to vector<1x128xf32>
    %65 = arith.mulf %64, %58 : vector<1x128xf32>
    %66 = arith.subf %55, %63 : vector<1x128xf32>
    %67 = arith.mulf %65, %66 : vector<1x128xf32>
    %68 = math.exp %67 : vector<1x128xf32>
    %69 = arith.negf %68 : vector<1x128xf32>
    %70 = math.exp %69 : vector<1x128xf32>
    %cst_47 = arith.constant 1.000000e+00 : f32
    %71 = vector.broadcast %cst_47 : f32 to vector<1x128xf32>
    %72 = arith.addf %71, %70 : vector<1x128xf32>
    %73 = arith.divf %71, %72 : vector<1x128xf32>
    %c0_48 = arith.constant 0 : index
    %c0_49 = arith.constant 0 : index
    %74 = vector.load %arg8[%c0_48, %c0_49] : memref<1x128xf32, #tpu.memory_space<vmem>>, vector<1x128xf32>
    tpu.vector_store %arg8[%c0_48, %c0_49], %73 {strides = array<i32>} : memref<1x128xf32, #tpu.memory_space<vmem>>, vector<1x128xf32>,
    return
  }
  func.func @transform_0(%arg0: i32) -> (i32, i32) {
    %c0_i32 = arith.constant 0 : i32
    %c0_i32_0 = arith.constant 0 : i32
    return %arg0, %c0_i32 : i32, i32
  }
  func.func @transform_1(%arg0: i32) -> (i32, i32) {
    %c0_i32 = arith.constant 0 : i32
    %c0_i32_0 = arith.constant 0 : i32
    return %arg0, %c0_i32 : i32, i32
  }
  func.func @transform_2(%arg0: i32) -> (i32, i32) {
    %c0_i32 = arith.constant 0 : i32
    %c0_i32_0 = arith.constant 0 : i32
    return %arg0, %c0_i32 : i32, i32
  }
  func.func @transform_3(%arg0: i32) -> (i32, i32, i32) {
    %c0_i32 = arith.constant 0 : i32
    %c0_i32_0 = arith.constant 0 : i32
    %c0_i32_1 = arith.constant 0 : i32
    %c0_i32_2 = arith.constant 0 : i32
    return %c0_i32, %c0_i32_0, %c0_i32_1 : i32, i32, i32
  }
  func.func @transform_4(%arg0: i32) -> (i32, i32, i32) {
    %c0_i32 = arith.constant 0 : i32
    %c0_i32_0 = arith.constant 0 : i32
    %c0_i32_1 = arith.constant 0 : i32
    %c0_i32_2 = arith.constant 0 : i32
    return %c0_i32, %c0_i32_0, %c0_i32_1 : i32, i32, i32
  }
  func.func @transform_5(%arg0: i32) -> (i32, i32, i32) {
    %c0_i32 = arith.constant 0 : i32
    %c0_i32_0 = arith.constant 0 : i32
    %c0_i32_1 = arith.constant 0 : i32
    %c0_i32_2 = arith.constant 0 : i32
    return %c0_i32, %c0_i32_0, %c0_i32_1 : i32, i32, i32
  }
  func.func @transform_6(%arg0: i32) -> (i32, i32) {
    %c0_i32 = arith.constant 0 : i32
    %c0_i32_0 = arith.constant 0 : i32
    %c0_i32_1 = arith.constant 0 : i32
    return %c0_i32, %c0_i32_0 : i32, i32
  }
  func.func @transform_7(%arg0: i32) -> (i32, i32) {
    %c0_i32 = arith.constant 0 : i32
    %c0_i32_0 = arith.constant 0 : i32
    return %c0_i32, %arg0 : i32, i32
  }
}

</mosaic_0001>

<bundles_post_ra>
// kernel: net_dirt_forward.1
= control target key start
LH: loop header
LB: loop body
LE: loop exit
PB: predicated region body
PF: predicated region fallthrough
CT: control target
= control target key end

     0   :  { %vm121_vm0 = vcmask 261120   ;;  %v1003_v1 = vmov 0   ;;  %v1004_v50 = vmov 0.0   ;;  %vm1005_vm1 = vmmov 0   ;;  %s1256_s0 = inlined_call_operand.vmem [shape: bf16[128,32], index: 0, kind: input, shape index: {}]   ;;  %s1257_s3 = inlined_call_operand.vmem [shape: bf16[3,32,32], index: 3, kind: input, shape index: {}]   ;;  %s1258_s2 = inlined_call_operand.vmem [shape: bf16[128,32], index: 2, kind: input, shape index: {}]   ;;  %s1259_s4 = inlined_call_operand.vmem [shape: f32[3,32,1], index: 4, kind: input, shape index: {}]   ;;  %s1260_s6 = inlined_call_operand.vmem [shape: f32[3,1], index: 6, kind: input, shape index: {}]   ;;  %s1261_s1 = inlined_call_operand.vmem [shape: bf16[128,32], index: 1, kind: input, shape index: {}]   ;;  %s1262_s5 = inlined_call_operand.vmem [shape: bf16[3,1,32], index: 5, kind: input, shape index: {}]   ;;  %s1263_s7 = inlined_call_operand.vmem [shape: f32[1,128], index: 7, kind: output, shape index: {}]  }
   0x1   :  { %v963_v0 = vld [vmem:[%s1256_s0] sm:$0xff]   ;;  %961 = vset.pattern.permute.xlu0 %v1003_v1  ;;  %962 = vset.pattern.permute.xlu1 %v1003_v1  ;;  %v964_v2 = vld [vmem:[%s1256_s0 + $0x8] sm:$0xff]   ;;  %v965_v4 = vld [vmem:[%s1256_s0 + $0x10] sm:$0xff]   ;;  %vm709_vm2 = vcmask 1040384   ;;  %vm711_vm3 = vcmask 1041408  }
   0x2   :  { %934 = vmatprep.subr.msk.bf16.mxu0 %vm121_vm0, %v963_v0  ;;  %v129_v3 = vsel %vm121_vm0, %v963_v0, 0  ;;  %v132_v5 = vsel %vm121_vm0, %v964_v2, 0  ;;  %v971_v6 = vld [vmem:[%s1257_s3] sm:$0xff]   ;;  %v135_v7 = vsel %vm121_vm0, %v965_v4, 0  ;;  %v966_v8 = vld [vmem:[%s1256_s0 + $0x18] sm:$0xff]   ;;  %v48_v10 = vld [vmem:[%s1259_s4 + $0x8] sm:$0xff]  ;;  %870 = vmatprep.subr.bf16.mxu1 %v1004_v50 }
   0x3   :  { %851 = vmatpush3.bf16.xpose.msra.mxu0 %v129_v3  ;;  %866 = vmatprep.mubr.msk.bf16.mxu0 %vm121_vm0, %v971_v6  ;;  %v47_v9 = vld [vmem:[%s1259_s4] sm:$0xff]  ;;  %v49_v11 = vld [vmem:[%s1259_s4 + $0x10] sm:$0xff]  ;;  %v50_v12 = vld [vmem:[%s1259_s4 + $0x18] sm:$0xff]  ;;  %v138_v14 = vsel %vm121_vm0, %v966_v8, 0 }
   0x4   :  { %935 = vmatprep.subr.msk.bf16.mxu0 %vm121_vm0, %v964_v2  ;;  %53 = vperm.xlu0 %961, %v47_v9   ;;  %v967_v13 = vld [vmem:[%s1256_s0 + $0x20] sm:$0xff]   ;;  %v769_v16 = vld [vmem:[%s1259_s4 + $0x28] sm:$0xff]  ;;  %v770_v17 = vld [vmem:[%s1259_s4 + $0x30] sm:$0xff] }
   0x5   :  { %63 = vperm.xlu1 %962, %v49_v11   ;;  %v768_v15 = vld [vmem:[%s1259_s4 + $0x20] sm:$0xff]  ;;  %v771_v18 = vld [vmem:[%s1259_s4 + $0x38] sm:$0xff]  ;;  %v141_v19 = vsel %vm121_vm0, %v967_v13, 0  ;;  %v968_v20 = vld [vmem:[%s1256_s0 + $0x28] sm:$0xff]   ;;  %874 = vmatprep.mubr.msk.bf16.mxu1 %vm1005_vm1, %v1004_v50 }
   0x6   :  { %v790_v21 = vld [vmem:[%s1259_s4 + $0x40] sm:$0xff]  ;;  %v791_v22 = vld [vmem:[%s1259_s4 + $0x48] sm:$0xff]  ;;  %v792_v23 = vld [vmem:[%s1259_s4 + $0x50] sm:$0xff]  ;;  %v144_v25 = vsel %vm121_vm0, %v968_v20, 0 }
   0x7   :  { %v793_v24 = vld [vmem:[%s1259_s4 + $0x58] sm:$0xff]  ;;  %v969_v26 = vld [vmem:[%s1256_s0 + $0x30] sm:$0xff]   ;;  %v713_v27 = vld [vmem:[%s1260_s6] sm:$0x7] }
   0x8   :  { %58 = vperm.xlu0 %961, %v48_v10   ;;  %v147_v28 = vsel %vm121_vm0, %v969_v26, 0  ;;  %v970_v29 = vld [vmem:[%s1256_s0 + $0x38] sm:$0xff]   ;;  %v973_v31 = vld [vmem:[%s1258_s2] sm:$0xff]   ;;  %v972_v32 = vld [vmem:[%s1257_s3 + $0x8] sm:$0xff]  }
   0x9   :  { %68 = vperm.xlu1 %962, %v50_v12   ;;  %v150_v30 = vsel %vm121_vm0, %v970_v29, 0  ;;  %v981_v33 = vld [vmem:[%s1257_s3 + $0x20] sm:$0xff]   ;;  %v580_v34 = vsel %vm121_vm0, %v973_v31, 0  ;;  %v974_v35 = vld [vmem:[%s1258_s2 + $0x8] sm:$0xff]   ;;  %v975_v37 = vld [vmem:[%s1258_s2 + $0x10] sm:$0xff]  }
   0xa   :  { %v583_v36 = vsel %vm121_vm0, %v974_v35, 0  ;;  %v586_v38 = vsel %vm121_vm0, %v975_v37, 0  ;;  %v976_v39 = vld [vmem:[%s1258_s2 + $0x18] sm:$0xff]   ;;  %v977_v41 = vld [vmem:[%s1258_s2 + $0x20] sm:$0xff]   ;;  %v978_v43 = vld [vmem:[%s1258_s2 + $0x28] sm:$0xff]  }
   0xb   :  { %853 = vmatpush3.bf16.xpose.msra.mxu0 %v132_v5  ;;  %v589_v40 = vsel %vm121_vm0, %v976_v39, 0  ;;  %v592_v42 = vsel %vm121_vm0, %v977_v41, 0  ;;  %v595_v44 = vsel %vm121_vm0, %v978_v43, 0  ;;  %v979_v45 = vld [vmem:[%s1258_s2 + $0x30] sm:$0xff]   ;;  %v980_v47 = vld [vmem:[%s1258_s2 + $0x38] sm:$0xff]   ;;  %v982_v49 = vld [vmem:[%s1257_s3 + $0x28] sm:$0xff]  }
   0xc   :  { %936 = vmatprep.subr.msk.bf16.mxu0 %vm121_vm0, %v965_v4  ;;  %279 = vperm.xlu0 %961, %v768_v15   ;;  %v598_v46 = vsel %vm121_vm0, %v979_v45, 0  ;;  %v601_v48 = vsel %vm121_vm0, %v980_v47, 0  ;;  %v983_v5 = vld [vmem:[%s1261_s1] sm:$0xff]   ;;  %v984_v9 = vld [vmem:[%s1261_s1 + $0x8] sm:$0xff]   ;;  %v985_v11 = vld [vmem:[%s1261_s1 + $0x10] sm:$0xff]  }
   0xd   :  { %284 = vperm.xlu1 %962, %v769_v16   ;;  %v207_v6 = vld [vmem:[%s1262_s5] sm:$0x1]  ;;  %v357_v10 = vsel %vm121_vm0, %v984_v9, 0  ;;  %v360_v12 = vsel %vm121_vm0, %v985_v11, 0 }
   0xe   :  { %v987_v15 = vld [vmem:[%s1261_s1 + $0x20] sm:$0xff]  }
  0x10   :  { %289 = vperm.xlu0 %961, %v770_v17  }
  0x11   :  { %294 = vperm.xlu1 %962, %v771_v18  }
  0x13   :  { %855 = vmatpush3.bf16.xpose.msra.mxu0 %v135_v7  ;;  %v991_v7 = vld [vmem:[%s1257_s3 + $0x10] sm:$0xff]  }
  0x14   :  { %937 = vmatprep.subr.msk.bf16.mxu0 %vm121_vm0, %v966_v8  ;;  %505 = vperm.xlu0 %961, %v790_v21   ;;  %v354_v8 = vsel %vm121_vm0, %v983_v5, 0 }
  0x15   :  { %510 = vperm.xlu1 %962, %v791_v22  }
  0x18   :  { %515 = vperm.xlu0 %961, %v792_v23  }
  0x19   :  { %520 = vperm.xlu1 %962, %v793_v24  }
  0x1b   :  { %857 = vmatpush3.bf16.xpose.msra.mxu0 %v138_v14 }
  0x1c   :  { %938 = vmatprep.subr.msk.bf16.mxu0 %vm121_vm0, %v967_v13  ;;  %716 = vperm.xlu0 %961, %v713_v27   ;;  %v986_v13 = vld [vmem:[%s1261_s1 + $0x18] sm:$0xff]  }
  0x1d   :  { %v363_v14 = vsel %vm121_vm0, %v986_v13, 0 }
  0x23   :  { %859 = vmatpush3.bf16.xpose.msra.mxu0 %v141_v19  ;;  %v366_v19 = vsel %vm121_vm0, %v987_v15, 0 }
  0x24   :  { %939 = vmatprep.subr.msk.bf16.mxu0 %vm121_vm0, %v968_v20  ;;  %v988_v20 = vld [vmem:[%s1261_s1 + $0x28] sm:$0xff]  }
  0x25   :  { %v369_v24 = vsel %vm121_vm0, %v988_v20, 0 }
  0x2b   :  { %861 = vmatpush3.bf16.xpose.msra.mxu0 %v144_v25  ;;  %v989_v25 = vld [vmem:[%s1261_s1 + $0x30] sm:$0xff]  }
  0x2c   :  { %940 = vmatprep.subr.msk.bf16.mxu0 %vm121_vm0, %v969_v26 }
  0x33   :  { %863 = vmatpush3.bf16.xpose.msra.mxu0 %v147_v28 }
  0x34   :  { %941 = vmatprep.subr.msk.bf16.mxu0 %vm121_vm0, %v970_v29 }
  0x3b   :  { %865 = vmatpush3.bf16.xpose.msra.mxu0 %v150_v30 }
  0x3c   :  { %950 = vmatprep.subr.msk.bf16.mxu0 %vm121_vm0, %v973_v31 }
  0x42   :  { %867 = vmatmul.mubr.msk.bf16.vlgmr.msra.gmra.mrb[0].mxu0 %vm121_vm0, %v972_v32 }
  0x43   :  { %907 = vmatpush3.bf16.xpose.msra.mxu0 %v580_v34  ;;  %922 = vmatprep.mubr.msk.bf16.mxu0 %vm121_vm0, %v981_v33 }
  0x44   :  { %951 = vmatprep.subr.msk.bf16.mxu0 %vm121_vm0, %v974_v35 }
  0x4b   :  { %909 = vmatpush3.bf16.xpose.msra.mxu0 %v583_v36  ;;  %v372_v36 = vsel %vm121_vm0, %v989_v25, 0 }
  0x4c   :  { %952 = vmatprep.subr.msk.bf16.mxu0 %vm121_vm0, %v975_v37  ;;  %v990_v37 = vld [vmem:[%s1261_s1 + $0x38] sm:$0xff]  }
  0x53   :  { %911 = vmatpush3.bf16.xpose.msra.mxu0 %v586_v38 }
  0x54   :  { %953 = vmatprep.subr.msk.bf16.mxu0 %vm121_vm0, %v976_v39 }
  0x5b   :  { %913 = vmatpush3.bf16.xpose.msra.mxu0 %v589_v40 }
  0x5c   :  { %954 = vmatprep.subr.msk.bf16.mxu0 %vm121_vm0, %v977_v41 }
  0x63   :  { %915 = vmatpush3.bf16.xpose.msra.mxu0 %v592_v42 }
  0x64   :  { %955 = vmatprep.subr.msk.bf16.mxu0 %vm121_vm0, %v978_v43 }
  0x6b   :  { %917 = vmatpush3.bf16.xpose.msra.mxu0 %v595_v44  ;;  %v375_v44 = vsel %vm121_vm0, %v990_v37, 0 }
  0x6c   :  { %956 = vmatprep.subr.msk.bf16.mxu0 %vm121_vm0, %v979_v45  ;;  %v992_v45 = vld [vmem:[%s1257_s3 + $0x18] sm:$0xff]  }
  0x73   :  { %919 = vmatpush3.bf16.xpose.msra.mxu0 %v598_v46 }
  0x74   :  { %957 = vmatprep.subr.msk.bf16.mxu0 %vm121_vm0, %v980_v47 }
  0x7b   :  { %921 = vmatpush3.bf16.xpose.msra.mxu0 %v601_v48 }
  0x82   :  { %923 = vmatmul.mubr.msk.bf16.vlgmr.msra.gmra.mrb[4].mxu0 %vm121_vm0, %v982_v49 }
  0x83   :  { %v54_v52 = vpop.permute.xlu0 %53 }
  0x84   :  { %v64_v51 = vpop.permute.xlu1 %63 }
  0x87   :  { %v59_v59 = vpop.permute.xlu0 %58 }
  0x88   :  { %v69_v56 = vpop.permute.xlu1 %68 }
  0x8b   :  { %v280_v16 = vpop.permute.xlu0 %279 }
  0x8c   :  { %v285_v17 = vpop.permute.xlu1 %284 }
  0x8f   :  { %v290_v18 = vpop.permute.xlu0 %289 }
  0x90   :  { %v295_v21 = vpop.permute.xlu1 %294 }
  0x93   :  { %v506_v22 = vpop.permute.xlu0 %505 }
  0x94   :  { %v511_v23 = vpop.permute.xlu1 %510 }
  0x97   :  { %v516_v26 = vpop.permute.xlu0 %515 }
  0x98   :  { %v521_v30 = vpop.permute.xlu1 %520 }
 0x115   :  { %v868_v53 = vpop.f32.mrb[0].mxu0 }
 0x116   :  { %v195_v54 = vadd.f32 %v868_v53, %v64_v51  ;;  %v186_v55 = vpop.f32.mrb[1].mxu0 }
 0x117   :  { %v187_v57 = vadd.f32 %v186_v55, %v54_v52  ;;  %v869_v58 = vpop.f32.mrb[2].mxu0 }
 0x118   :  { %v198_v60 = vadd.f32 %v869_v58, %v69_v56  ;;  %v189_v61 = vpop.f32.mrb[3].mxu0  ;;  %v203_v63 = vmax.f32 %v195_v54, 0.0 }
 0x119   :  { %v190_v62 = vadd.f32 %v189_v61, %v59_v59  ;;  %v201_v1 = vmax.f32 %v187_v57, 0.0 }
 0x11a   :  { %v204_v0 = vmax.f32 %v198_v60, 0.0 }
 0x11b   :  { %v202_v2 = vmax.f32 %v190_v62, 0.0 }
 0x11c   :  { %v206_v3 = vpack.c.bf16 %v204_v0, %v203_v63 }
 0x11d   :  { %v205_v4 = vpack.c.bf16 %v202_v2, %v201_v1  ;;  %v784_v1 = vld [vmem:[%s1262_s5 + $0x1] sm:$0x1]  ;;  %v806_v2 = vld [vmem:[%s1262_s5 + $0x2] sm:$0x1] }
 0x11f   :  { %871 = vmatpush3.bf16.msra.mxu1 %v205_v4 }
 0x120   :  { %872 = vmatprep.subr.bf16.mxu1 %v1004_v50 }
 0x123   :  { %873 = vmatpush3.bf16.msra.mxu1 %v206_v3 }
 0x124   :  { %942 = vmatprep.subr.msk.bf16.mxu1 %vm121_vm0, %v983_v5 }
 0x126   :  { %875 = vmatmul.mubr.msk.bf16.vlgmr.msra.gmra.mrb[0].mxu1 %vm121_vm0, %v207_v6 }
 0x127   :  { %894 = vmatprep.mubr.msk.bf16.mxu1 %vm121_vm0, %v991_v7 }
 0x12c   :  { %879 = vmatpush3.bf16.xpose.msra.mxu1 %v354_v8 }
 0x12d   :  { %943 = vmatprep.subr.msk.bf16.mxu1 %vm121_vm0, %v984_v9 }
 0x134   :  { %881 = vmatpush3.bf16.xpose.msra.mxu1 %v357_v10 }
 0x135   :  { %944 = vmatprep.subr.msk.bf16.mxu1 %vm121_vm0, %v985_v11 }
 0x13c   :  { %883 = vmatpush3.bf16.xpose.msra.mxu1 %v360_v12 }
 0x13d   :  { %945 = vmatprep.subr.msk.bf16.mxu1 %vm121_vm0, %v986_v13 }
 0x144   :  { %885 = vmatpush3.bf16.xpose.msra.mxu1 %v363_v14 }
 0x145   :  { %946 = vmatprep.subr.msk.bf16.mxu1 %vm121_vm0, %v987_v15 }
 0x14c   :  { %887 = vmatpush3.bf16.xpose.msra.mxu1 %v366_v19 }
 0x14d   :  { %947 = vmatprep.subr.msk.bf16.mxu1 %vm121_vm0, %v988_v20 }
 0x154   :  { %889 = vmatpush3.bf16.xpose.msra.mxu1 %v369_v24 }
 0x155   :  { %v924_v27 = vpop.f32.mrb[4].mxu0  ;;  %948 = vmatprep.subr.msk.bf16.mxu1 %vm121_vm0, %v989_v25 }
 0x156   :  { %v646_v28 = vadd.f32 %v924_v27, %v516_v26  ;;  %v637_v29 = vpop.f32.mrb[5].mxu0 }
 0x157   :  { %v638_v31 = vadd.f32 %v637_v29, %v506_v22  ;;  %v925_v32 = vpop.f32.mrb[6].mxu0 }
 0x158   :  { %v649_v33 = vadd.f32 %v925_v32, %v521_v30  ;;  %v640_v34 = vpop.f32.mrb[7].mxu0  ;;  %v654_v38 = vmax.f32 %v646_v28, 0.0 }
 0x159   :  { %v641_v35 = vadd.f32 %v640_v34, %v511_v23  ;;  %v652_v40 = vmax.f32 %v638_v31, 0.0 }
 0x15a   :  { %v655_v39 = vmax.f32 %v649_v33, 0.0 }
 0x15b   :  { %v653_v41 = vmax.f32 %v641_v35, 0.0 }
 0x15c   :  { %v657_v42 = vpack.c.bf16 %v655_v39, %v654_v38  ;;  %891 = vmatpush3.bf16.xpose.msra.mxu1 %v372_v36 }
 0x15d   :  { %v656_v43 = vpack.c.bf16 %v653_v41, %v652_v40  ;;  %949 = vmatprep.subr.msk.bf16.mxu1 %vm121_vm0, %v990_v37 }
 0x164   :  { %893 = vmatpush3.bf16.xpose.msra.mxu1 %v375_v44 }
 0x165   :  { %898 = vmatprep.subr.bf16.mxu1 %v1004_v50 }
 0x16b   :  { %895 = vmatmul.mubr.msk.bf16.vlgmr.msra.gmra.mrb[4].mxu1 %vm121_vm0, %v992_v45 }
 0x16c   :  { %902 = vmatprep.mubr.msk.bf16.mxu1 %vm1005_vm1, %v1004_v50 }
 0x1f9   :  { %v245_v46 = vpop.f32.mrb[0].mxu1 }
 0x1fa   :  { %v876_v47 = vpop.f32.mrb[1].mxu1 }
 0x1fb   :  { %v248_v48 = vpop.f32.mrb[2].mxu1 }
 0x1fc   :  { %v877_v49 = vpop.f32.mrb[3].mxu1 }
 0x23e   :  { %v896_v51 = vpop.f32.mrb[4].mxu1 }
 0x23f   :  { %v420_v52 = vadd.f32 %v896_v51, %v290_v18  ;;  %v411_v53 = vpop.f32.mrb[5].mxu1 }
 0x240   :  { %v412_v54 = vadd.f32 %v411_v53, %v280_v16  ;;  %v897_v55 = vpop.f32.mrb[6].mxu1 }
 0x241   :  { %v423_v56 = vadd.f32 %v897_v55, %v295_v21  ;;  %v414_v57 = vpop.f32.mrb[7].mxu1  ;;  %v428_v59 = vmax.f32 %v420_v52, 0.0 }
 0x242   :  { %v415_v58 = vadd.f32 %v414_v57, %v285_v17  ;;  %v426_v61 = vmax.f32 %v412_v54, 0.0 }
 0x243   :  { %v429_v60 = vmax.f32 %v423_v56, 0.0 }
 0x244   :  { %v427_v62 = vmax.f32 %v415_v58, 0.0 }
 0x245   :  { %v431_v63 = vpack.c.bf16 %v429_v60, %v428_v59 }
 0x246   :  { %v430_v0 = vpack.c.bf16 %v427_v62, %v426_v61 }
 0x248   :  { %899 = vmatpush3.bf16.msra.mxu1 %v430_v0 }
 0x249   :  { %900 = vmatprep.subr.bf16.mxu1 %v1004_v50 }
 0x24c   :  { %901 = vmatpush3.bf16.msra.mxu1 %v431_v63 }
 0x24d   :  { %926 = vmatprep.subr.bf16.mxu1 %v1004_v50 }
 0x24f   :  { %903 = vmatmul.mubr.msk.bf16.vlgmr.msra.gmra.mrb[8].mxu1 %vm121_vm0, %v784_v1 }
 0x250   :  { %927 = vmatpush3.bf16.msra.mxu1 %v656_v43  ;;  %930 = vmatprep.mubr.msk.bf16.mxu1 %vm1005_vm1, %v1004_v50 }
 0x251   :  { %928 = vmatprep.subr.bf16.mxu1 %v1004_v50  ;;  %v717_v50 = vpop.permute.xlu0 %716 }
 0x254   :  { %929 = vmatpush3.bf16.msra.mxu1 %v657_v42 }
 0x257   :  { %931 = vmatmul.mubr.msk.bf16.vlgmr.msra.gmra.mrb[12].mxu1 %vm121_vm0, %v806_v2 }
 0x322   :  { %v471_v3 = vpop.f32.mrb[8].mxu1 }
 0x323   :  { %v704_v4 = vrot.slane %v471_v3, 7  ;;  %v904_v5 = vpop.f32.mrb[9].mxu1 }
 0x324   :  { %v474_v6 = vpop.f32.mrb[10].mxu1 }
 0x325   :  { %v710_v7 = vsel %vm709_vm2, %v245_v46, %v704_v4  ;;  %v905_v8 = vpop.f32.mrb[11].mxu1 }
 0x32a   :  { %v697_v9 = vpop.f32.mrb[12].mxu1 }
 0x32b   :  { %v707_v10 = vrot.slane %v697_v9, 6  ;;  %v932_v11 = vpop.f32.mrb[13].mxu1 }
 0x32c   :  { %v700_v12 = vpop.f32.mrb[14].mxu1 }
 0x32d   :  { %v712_v13 = vsel %vm711_vm3, %v710_v7, %v707_v10  ;;  %v933_v14 = vpop.f32.mrb[15].mxu1 }
 0x32e   :  { %v719_v15 = vadd.f32 %v717_v50, %v712_v13 }
 0x330   :  { %v808_v16 = vmul.f32 -1.442695, %v719_v15 }
 0x332   :  { %993 = vpow2.f32 %v808_v16 }
 0x33c   :  { %v994_v17 = vpop.eup %993 }
 0x33d   :  { %v723_v18 = vadd.f32 1.0, %v994_v17 }
 0x33f   :  { %995 = vrcp.f32 %v723_v18 }
 0x349   :  { %v996_v19 = vpop.eup %995 }
 0x34a   :  { %v809_v20 = vadd.f32 -0.5, %v996_v19  ;;  %v728_v22 = vmul.f32 2.0, %v996_v19 }
 0x34c   :  { %v727_v21 = vmul.f32 8.0, %v809_v20  ;;  %v729_v25 = vmul.f32 -1.7, %v728_v22 }
 0x34e   :  { %v731_v23 = vrot.slane %v727_v21, 2 }
 0x350   :  { %v733_v24 = vsub.f32 %v727_v21, %v731_v23 }
 0x352   :  { %v735_v26 = vrot.slane %v733_v24, 7 }
 0x354   :  { %v737_v27 = vmul.f32 %v735_v26, %v729_v25 }
 0x356   :  { %v738_v28 = vmul.f32 1.442695, %v737_v27 }
 0x358   :  { %997 = vpow2.f32 %v738_v28 }
 0x362   :  { %v998_v29 = vpop.eup %997 }
 0x363   :  { %v810_v30 = vmul.f32 -1.442695, %v998_v29 }
 0x365   :  { %999 = vpow2.f32 %v810_v30 }
 0x36f   :  { %v1000_v31 = vpop.eup %999 }
 0x370   :  { %v743_v32 = vadd.f32 1.0, %v1000_v31 }
 0x372   :  { %1001 = vrcp.f32 %v743_v32 }
 0x37c   :  { %v1002_v33 = vpop.eup %1001 }
 0x37d   :  { %746 = vst [vmem:[%s1263_s7 - $0x1] sm:$0x2] %v1002_v33 }

</bundles_post_ra>
